<compile_context>
chip_gen: v6e
topology: v6e:2x2x1
jax: 0.10.0
libtpu: 0.0.40
codegen_flags: <defaults>
</compile_context>

<pallas_src>
import numpy as np
import jax
import jax.numpy as jnp
from jax import lax
from jax.experimental import pallas as pl
from jax.experimental.pallas import tpu as pltpu

EPS = 1e-5


def up_kernel(x1_ref, x2_ref, interp_ref,
              w1_ref, g1_ref, b1_ref,
              w2_ref, g2_ref, b2_ref,
              o_ref):
    # x1_ref:     (B, C1, L1) f32  NCL, branch to upsample
    # x2_ref:     (B, C2, L2) f32  NCL, skip connection
    # interp_ref: (L1, L2)    f32  shared upsample(+pad) matrix
    # w*_ref:     (3, Co, Ci) bf16 conv taps, k=0: x[l-1], k=1: x[l], k=2: x[l+1]
    # g*/b*_ref:  (1, C, 1)   f32  BatchNorm affine params
    # o_ref:      (B, Cout, L2) f32 NCL output
    B, C1, L1 = x1_ref.shape
    _, C2, L2 = x2_ref.shape
    inv_n = 1.0 / float(B * L2)

    # Boundary masks for the k=3 taps, hoisted once and reused by both conv layers.
    col = lax.broadcasted_iota(jnp.int32, (1, L2), 1)
    not_first = col != 0            # x[l-1] exists (left tap valid)
    not_last = col != (L2 - 1)      # x[l+1] exists (right tap valid)

    def conv3(x3, w_ref):
        # Conv1d(k=3, pad=1, no bias) as three accumulating batched bf16 MXU matmuls.
        # Taps are XLU rolls of the center slab; rolls wrap within each (b, c) row, so the
        # hoisted masks zero exactly the zero-padded boundary columns.
        Bb, C, L = x3.shape
        Co = w_ref.shape[1]
        x2d = x3.reshape(Bb * C, L)                       # layout no-op reshape (C % 8 == 0)
        left = jnp.where(not_first, pltpu.roll(x2d, 1, axis=1), 0.0).reshape(Bb, C, L)
        right = jnp.where(not_last, pltpu.roll(x2d, L - 1, axis=1), 0.0).reshape(Bb, C, L)

        def bmm(wk, v):
            # (Co, C) x (B, C, L) -> (B, Co, L) as a canonical batched MXU matmul
            return jnp.einsum('boc,bcl->bol',
                              jnp.broadcast_to(wk, (Bb, Co, C)),
                              v.astype(jnp.bfloat16),
                              preferred_element_type=jnp.float32)

        acc = bmm(w_ref[0], left)
        acc = acc + bmm(w_ref[1], x3)
        acc = acc + bmm(w_ref[2], right)
        return acc                                        # (B, Co, L) f32

    def bn_relu(y3, g_ref, b_ref):
        # training-mode BatchNorm1d over (B, L) per channel, single-pass fused statistics:
        # var = E[y^2] - mean^2, 1/N hoisted, rsqrt on the EUP.
        s1 = jnp.sum(y3, axis=2, keepdims=True)           # lane reduce   -> (B, C, 1)
        s2 = jnp.sum(y3 * y3, axis=2, keepdims=True)
        s1 = jnp.sum(s1, axis=0, keepdims=True)           # batch reduce  -> (1, C, 1)
        s2 = jnp.sum(s2, axis=0, keepdims=True)
        mean = s1 * inv_n
        var = s2 * inv_n - mean * mean
        scale = lax.rsqrt(var + EPS) * g_ref[...]
        return jnp.maximum((y3 - mean) * scale + b_ref[...], 0.0)

    # Upsample(+pad): one shared (L1, L2) interp matrix, batch handled as a batched matmul
    # (no O(B^2) block-diagonal operand, no per-batch staging).
    x1up = jnp.einsum('bci,bil->bcl', x1_ref[...],
                      jnp.broadcast_to(interp_ref[...], (B, L1, L2)),
                      preferred_element_type=jnp.float32)          # (B, C1, L2) f32

    x_cat = jnp.concatenate([x2_ref[...], x1up], axis=1)            # cat([x2, x1], dim=1)

    a1 = bn_relu(conv3(x_cat, w1_ref), g1_ref, b1_ref)              # (B, Cmid, L2)
    y2 = bn_relu(conv3(a1, w2_ref), g2_ref, b2_ref)                 # (B, Cout, L2)
    o_ref[...] = y2                                                 # single NCL store


def build_upsample_pad_matrix(L1, L2, scale=2):
    """M (L2, L1): y = M @ x == pad(linear_upsample_align_corners(x)) (numpy, host-side)."""
    L_up = L1 * scale
    U = np.zeros((L_up, L1), np.float32)
    for o in range(L_up):
        src = o * (L1 - 1) / (L_up - 1) if L_up > 1 else 0.0
        lo = int(np.floor(src))
        hi = min(lo + 1, L1 - 1)
        w = src - lo
        U[o, lo] += 1.0 - w
        U[o, hi] += w
    diff = L2 - L_up
    assert diff >= 0, "cropping (negative pad) not supported in this synthetic setup"
    p_left = diff // 2
    M = np.zeros((L2, L1), np.float32)
    M[p_left:p_left + L_up, :] = U
    return M


def prepare_kernel_params(raw, L1, L2):
    """Host-side weight prep: shared (L1, L2) interp matrix, (3, Co, Ci) bf16 conv taps."""
    return {
        "interp": jnp.asarray(build_upsample_pad_matrix(L1, L2).T),           # (L1, L2) f32
        "w1": jnp.transpose(raw["w1"], (0, 2, 1)).astype(jnp.bfloat16),       # (3, Cmid, Cin)
        "g1": raw["g1"].reshape(1, -1, 1), "b1": raw["b1"].reshape(1, -1, 1),
        "w2": jnp.transpose(raw["w2"], (0, 2, 1)).astype(jnp.bfloat16),       # (3, Cout, Cmid)
        "g2": raw["g2"].reshape(1, -1, 1), "b2": raw["b2"].reshape(1, -1, 1),
    }


def up_forward(x1_ncl, x2_ncl, kp):
    """x1: (B, C1, L1), x2: (B, C2, L2) -> (B, Cout, L2); PyTorch NCL in/out, no transposes."""
    B, C1, L1 = x1_ncl.shape
    _, C2, L2 = x2_ncl.shape
    Cout = kp["w2"].shape[1]

    vmem = pl.BlockSpec(memory_space=pltpu.MemorySpace.VMEM)
    return pl.pallas_call(
        up_kernel,
        out_shape=jax.ShapeDtypeStruct((B, Cout, L2), jnp.float32),
        in_specs=[vmem] * 9,
        out_specs=vmem,
    )(x1_ncl, x2_ncl, kp["interp"],
      kp["w1"], kp["g1"], kp["b1"],
      kp["w2"], kp["g2"], kp["b2"])


# ------------------------- pure-JAX reference (f32) -------------------------
def reference(x1_ncl, x2_ncl, raw, L2):
    U = jnp.asarray(build_upsample_pad_matrix(x1_ncl.shape[2], L2))
    x1p = jnp.einsum("oi,bci->bco", U, x1_ncl.astype(jnp.float32))  # upsample + pad
    x = jnp.concatenate([x2_ncl.astype(jnp.float32), x1p], axis=1)  # cat([x2, x1], dim=1)

    def conv_bn_relu(x, w, g, bta):
        wt = jnp.transpose(w, (2, 1, 0))  # (Cout, Cin, K), torch layout
        y = lax.conv_general_dilated(x, wt, window_strides=(1,), padding=((1, 1),),
                                     dimension_numbers=("NCH", "OIH", "NCH"))
        mean = jnp.mean(y, axis=(0, 2), keepdims=True)
        var = jnp.mean((y - mean) ** 2, axis=(0, 2), keepdims=True)
        y = (y - mean) * lax.rsqrt(var + EPS)
        y = y * g.reshape(1, -1, 1) + bta.reshape(1, -1, 1)
        return jnp.maximum(y, 0.0)

    y = conv_bn_relu(x, raw["w1"], raw["g1"], raw["b1"])
    return conv_bn_relu(y, raw["w2"], raw["g2"], raw["b2"])


if __name__ == "__main__":
    # Up(in_channels=16, out_channels=8, bilinear=True, scale_factor=2)
    B, C1, C2 = 2, 8, 8          # x1 channels, x2 channels (cat -> in_channels=16)
    L1, L2 = 7, 16               # upsample 7 -> 14, pad [1, 1] -> 16
    Cin, Cmid, Cout = C1 + C2, (C1 + C2) // 2, 8

    key = jax.random.PRNGKey(0)
    ks = jax.random.split(key, 8)
    # snap test data/weights to bf16-representable values so the bf16 MXU path stays
    # comparable to the f32 reference under a tight tolerance
    bf = lambda a: a.astype(jnp.bfloat16).astype(jnp.float32)

    x1 = bf(jax.random.normal(ks[0], (B, C1, L1), jnp.float32))
    x2 = bf(jax.random.normal(ks[1], (B, C2, L2), jnp.float32))
    raw = {
        "w1": bf(jax.random.normal(ks[2], (3, Cin, Cmid), jnp.float32) * 0.2),   # conv1 (k, ci, co)
        "w2": bf(jax.random.normal(ks[3], (3, Cmid, Cout), jnp.float32) * 0.2),  # conv2 (k, ci, co)
        "g1": jax.random.uniform(ks[4], (Cmid,), jnp.float32, 0.5, 1.5),
        "b1": jax.random.normal(ks[5], (Cmid,), jnp.float32) * 0.1,
        "g2": jax.random.uniform(ks[6], (Cout,), jnp.float32, 0.5, 1.5),
        "b2": jax.random.normal(ks[7], (Cout,), jnp.float32) * 0.1,
    }
    kp = prepare_kernel_params(raw, L1, L2)

    out = jax.block_until_ready(up_forward(x1, x2, kp))
    ref = jax.block_until_ready(reference(x1, x2, raw, L2))
    assert out.shape == (B, Cout, L2), out.shape
    np.testing.assert_allclose(np.asarray(out), np.asarray(ref), rtol=2e-2, atol=2e-2)
    print("KERNEL_OK")
</pallas_src>

<mosaic_0001>
module attributes {stable_mosaic.version = 11 : i64} {
  func.func @up_kernel(%arg0: memref<2x8x7xf32, #tpu.memory_space<vmem>>, %arg1: memref<2x8x16xf32, #tpu.memory_space<vmem>>, %arg2: memref<7x16xf32, #tpu.memory_space<vmem>>, %arg3: memref<3x8x16xbf16, #tpu.memory_space<vmem>>, %arg4: memref<1x8x1xf32, #tpu.memory_space<vmem>>, %arg5: memref<1x8x1xf32, #tpu.memory_space<vmem>>, %arg6: memref<3x8x8xbf16, #tpu.memory_space<vmem>>, %arg7: memref<1x8x1xf32, #tpu.memory_space<vmem>>, %arg8: memref<1x8x1xf32, #tpu.memory_space<vmem>>, %arg9: memref<2x8x16xf32, #tpu.memory_space<vmem>>) attributes {dimension_semantics = [], scalar_prefetch = 0 : i64, scratch_operands = 0 : i64, tpu.core_type = #tpu.core_type<tc>} {
    %0 = tpu.iota {dimensions = array<i32: 1>} : vector<1x16xi32>
    %c0_i32 = arith.constant 0 : i32
    %1 = vector.broadcast %c0_i32 : i32 to vector<1x16xi32>
    %2 = arith.cmpi ne, %0, %1 : vector<1x16xi32>
    %c15_i32 = arith.constant 15 : i32
    %3 = vector.broadcast %c15_i32 : i32 to vector<1x16xi32>
    %4 = arith.cmpi ne, %0, %3 : vector<1x16xi32>
    %c0 = arith.constant 0 : index
    %c0_0 = arith.constant 0 : index
    %c0_1 = arith.constant 0 : index
    %5 = vector.load %arg0[%c0, %c0_0, %c0_1] : memref<2x8x7xf32, #tpu.memory_space<vmem>>, vector<2x8x7xf32>
    %c0_2 = arith.constant 0 : index
    %c0_3 = arith.constant 0 : index
    %6 = vector.load %arg2[%c0_2, %c0_3] : memref<7x16xf32, #tpu.memory_space<vmem>>, vector<7x16xf32>
    %7 = vector.shape_cast %6 : vector<7x16xf32> to vector<1x7x16xf32>
    %8 = vector.broadcast %7 : vector<1x7x16xf32> to vector<2x7x16xf32>
    "tpu.trace_start"() <{level = 10 : i32, message = "bci,bil->bcl"}> : () -> ()
    %cst = arith.constant dense<0.000000e+00> : vector<2x8x16xf32>
    %9 = tpu.matmul %5, %8, %cst {dimension_numbers = #tpu.dot_dimension_numbers<[2], [1], [1], [2], [0, 0, 0, 1, 1, 2], [0], [0]>} : vector<2x8x7xf32>, vector<2x7x16xf32>, vector<2x8x16xf32> -> vector<2x8x16xf32>
    "tpu.trace_stop"() : () -> ()
    %c0_4 = arith.constant 0 : index
    %c0_5 = arith.constant 0 : index
    %c0_6 = arith.constant 0 : index
    %10 = vector.load %arg1[%c0_4, %c0_5, %c0_6] : memref<2x8x16xf32, #tpu.memory_space<vmem>>, vector<2x8x16xf32>
    %11 = tpu.concatenate %10, %9 in 1 : vector<2x8x16xf32>, vector<2x8x16xf32> -> vector<2x16x16xf32>
    %12 = vector.shape_cast %11 : vector<2x16x16xf32> to vector<32x16xf32>
    %c1_i32 = arith.constant 1 : i32
    %13 = tpu.dynamic_rotate %12 by %c1_i32 dim 1 : vector<32x16xf32>, i32 -> vector<32x16xf32>
    %cst_7 = arith.constant 0.000000e+00 : f32
    %14 = vector.shape_cast %2 : vector<1x16xi1> to vector<1x16xi1>
    %15 = vector.broadcast %14 : vector<1x16xi1> to vector<32x16xi1>
    %16 = vector.broadcast %cst_7 : f32 to vector<32x16xf32>
    %17 = arith.select %15, %13, %16 : vector<32x16xi1>, vector<32x16xf32>
    %18 = vector.shape_cast %17 : vector<32x16xf32> to vector<2x16x16xf32>
    %c15_i32_8 = arith.constant 15 : i32
    %19 = tpu.dynamic_rotate %12 by %c15_i32_8 dim 1 : vector<32x16xf32>, i32 -> vector<32x16xf32>
    %cst_9 = arith.constant 0.000000e+00 : f32
    %20 = vector.shape_cast %4 : vector<1x16xi1> to vector<1x16xi1>
    %21 = vector.broadcast %20 : vector<1x16xi1> to vector<32x16xi1>
    %22 = vector.broadcast %cst_9 : f32 to vector<32x16xf32>
    %23 = arith.select %21, %19, %22 : vector<32x16xi1>, vector<32x16xf32>
    %24 = vector.shape_cast %23 : vector<32x16xf32> to vector<2x16x16xf32>
    %c0_10 = arith.constant 0 : index
    %c0_11 = arith.constant 0 : index
    %c0_12 = arith.constant 0 : index
    %25 = vector.load %arg3[%c0_10, %c0_11, %c0_12] : memref<3x8x16xbf16, #tpu.memory_space<vmem>>, vector<1x8x16xbf16>
    %26 = vector.shape_cast %25 : vector<1x8x16xbf16> to vector<8x16xbf16>
    %27 = vector.shape_cast %26 : vector<8x16xbf16> to vector<1x8x16xbf16>
    %28 = vector.broadcast %27 : vector<1x8x16xbf16> to vector<2x8x16xbf16>
    %29 = arith.truncf %18 : vector<2x16x16xf32> to vector<2x16x16xbf16>
    "tpu.trace_start"() <{level = 10 : i32, message = "boc,bcl->bol"}> : () -> ()
    %cst_13 = arith.constant dense<0.000000e+00> : vector<2x8x16xf32>
    %30 = tpu.matmul %28, %29, %cst_13 {dimension_numbers = #tpu.dot_dimension_numbers<[2], [1], [1], [2], [0, 0, 0, 1, 1, 2], [0], [0]>} : vector<2x8x16xbf16>, vector<2x16x16xbf16>, vector<2x8x16xf32> -> vector<2x8x16xf32>
    "tpu.trace_stop"() : () -> ()
    %c1 = arith.constant 1 : index
    %c0_14 = arith.constant 0 : index
    %c0_15 = arith.constant 0 : index
    %31 = vector.load %arg3[%c1, %c0_14, %c0_15] : memref<3x8x16xbf16, #tpu.memory_space<vmem>>, vector<1x8x16xbf16>
    %32 = vector.shape_cast %31 : vector<1x8x16xbf16> to vector<8x16xbf16>
    %33 = vector.shape_cast %32 : vector<8x16xbf16> to vector<1x8x16xbf16>
    %34 = vector.broadcast %33 : vector<1x8x16xbf16> to vector<2x8x16xbf16>
    %35 = arith.truncf %11 : vector<2x16x16xf32> to vector<2x16x16xbf16>
    "tpu.trace_start"() <{level = 10 : i32, message = "boc,bcl->bol"}> : () -> ()
    %cst_16 = arith.constant dense<0.000000e+00> : vector<2x8x16xf32>
    %36 = tpu.matmul %34, %35, %cst_16 {dimension_numbers = #tpu.dot_dimension_numbers<[2], [1], [1], [2], [0, 0, 0, 1, 1, 2], [0], [0]>} : vector<2x8x16xbf16>, vector<2x16x16xbf16>, vector<2x8x16xf32> -> vector<2x8x16xf32>
    "tpu.trace_stop"() : () -> ()
    %37 = arith.addf %30, %36 : vector<2x8x16xf32>
    %c2 = arith.constant 2 : index
    %c0_17 = arith.constant 0 : index
    %c0_18 = arith.constant 0 : index
    %38 = vector.load %arg3[%c2, %c0_17, %c0_18] : memref<3x8x16xbf16, #tpu.memory_space<vmem>>, vector<1x8x16xbf16>
    %39 = vector.shape_cast %38 : vector<1x8x16xbf16> to vector<8x16xbf16>
    %40 = vector.shape_cast %39 : vector<8x16xbf16> to vector<1x8x16xbf16>
    %41 = vector.broadcast %40 : vector<1x8x16xbf16> to vector<2x8x16xbf16>
    %42 = arith.truncf %24 : vector<2x16x16xf32> to vector<2x16x16xbf16>
    "tpu.trace_start"() <{level = 10 : i32, message = "boc,bcl->bol"}> : () -> ()
    %cst_19 = arith.constant dense<0.000000e+00> : vector<2x8x16xf32>
    %43 = tpu.matmul %41, %42, %cst_19 {dimension_numbers = #tpu.dot_dimension_numbers<[2], [1], [1], [2], [0, 0, 0, 1, 1, 2], [0], [0]>} : vector<2x8x16xbf16>, vector<2x16x16xbf16>, vector<2x8x16xf32> -> vector<2x8x16xf32>
    "tpu.trace_stop"() : () -> ()
    %44 = arith.addf %37, %43 : vector<2x8x16xf32>
    %cst_20 = arith.constant dense<0.000000e+00> : vector<2x8xf32>
    %45 = vector.multi_reduction <add>, %44, %cst_20 [2] : vector<2x8x16xf32> to vector<2x8xf32>
    %46 = vector.shape_cast %45 : vector<2x8xf32> to vector<2x8x1xf32>
    %47 = arith.mulf %44, %44 : vector<2x8x16xf32>
    %cst_21 = arith.constant dense<0.000000e+00> : vector<2x8xf32>
    %48 = vector.multi_reduction <add>, %47, %cst_21 [2] : vector<2x8x16xf32> to vector<2x8xf32>
    %49 = vector.shape_cast %48 : vector<2x8xf32> to vector<2x8x1xf32>
    %cst_22 = arith.constant dense<0.000000e+00> : vector<8x1xf32>
    %50 = vector.multi_reduction <add>, %46, %cst_22 [0] : vector<2x8x1xf32> to vector<8x1xf32>
    %51 = vector.shape_cast %50 : vector<8x1xf32> to vector<1x8x1xf32>
    %cst_23 = arith.constant dense<0.000000e+00> : vector<8x1xf32>
    %52 = vector.multi_reduction <add>, %49, %cst_23 [0] : vector<2x8x1xf32> to vector<8x1xf32>
    %53 = vector.shape_cast %52 : vector<8x1xf32> to vector<1x8x1xf32>
    %cst_24 = arith.constant 3.125000e-02 : f32
    %54 = vector.broadcast %cst_24 : f32 to vector<1x8x1xf32>
    %55 = arith.mulf %51, %54 : vector<1x8x1xf32>
    %cst_25 = arith.constant 3.125000e-02 : f32
    %56 = vector.broadcast %cst_25 : f32 to vector<1x8x1xf32>
    %57 = arith.mulf %53, %56 : vector<1x8x1xf32>
    %58 = arith.mulf %55, %55 : vector<1x8x1xf32>
    %59 = arith.subf %57, %58 : vector<1x8x1xf32>
    %cst_26 = arith.constant 9.99999974E-6 : f32
    %60 = vector.broadcast %cst_26 : f32 to vector<1x8x1xf32>
    %61 = arith.addf %59, %60 : vector<1x8x1xf32>
    %62 = math.rsqrt %61 : vector<1x8x1xf32>
    %c0_27 = arith.constant 0 : index
    %c0_28 = arith.constant 0 : index
    %c0_29 = arith.constant 0 : index
    %63 = vector.load %arg4[%c0_27, %c0_28, %c0_29] : memref<1x8x1xf32, #tpu.memory_space<vmem>>, vector<1x8x1xf32>
    %64 = arith.mulf %62, %63 : vector<1x8x1xf32>
    %65 = vector.broadcast %55 : vector<1x8x1xf32> to vector<2x8x16xf32>
    %66 = arith.subf %44, %65 : vector<2x8x16xf32>
    %67 = vector.broadcast %64 : vector<1x8x1xf32> to vector<2x8x16xf32>
    %68 = arith.mulf %66, %67 : vector<2x8x16xf32>
    %c0_30 = arith.constant 0 : index
    %c0_31 = arith.constant 0 : index
    %c0_32 = arith.constant 0 : index
    %69 = vector.load %arg5[%c0_30, %c0_31, %c0_32] : memref<1x8x1xf32, #tpu.memory_space<vmem>>, vector<1x8x1xf32>
    %70 = vector.broadcast %69 : vector<1x8x1xf32> to vector<2x8x16xf32>
    %71 = arith.addf %68, %70 : vector<2x8x16xf32>
    %cst_33 = arith.constant 0.000000e+00 : f32
    %72 = vector.broadcast %cst_33 : f32 to vector<2x8x16xf32>
    %73 = arith.maximumf %71, %72 : vector<2x8x16xf32>
    %74 = vector.shape_cast %73 : vector<2x8x16xf32> to vector<16x16xf32>
    %c1_i32_34 = arith.constant 1 : i32
    %75 = tpu.dynamic_rotate %74 by %c1_i32_34 dim 1 : vector<16x16xf32>, i32 -> vector<16x16xf32>
    %cst_35 = arith.constant 0.000000e+00 : f32
    %76 = vector.shape_cast %2 : vector<1x16xi1> to vector<1x16xi1>
    %77 = vector.broadcast %76 : vector<1x16xi1> to vector<16x16xi1>
    %78 = vector.broadcast %cst_35 : f32 to vector<16x16xf32>
    %79 = arith.select %77, %75, %78 : vector<16x16xi1>, vector<16x16xf32>
    %80 = vector.shape_cast %79 : vector<16x16xf32> to vector<2x8x16xf32>
    %c15_i32_36 = arith.constant 15 : i32
    %81 = tpu.dynamic_rotate %74 by %c15_i32_36 dim 1 : vector<16x16xf32>, i32 -> vector<16x16xf32>
    %cst_37 = arith.constant 0.000000e+00 : f32
    %82 = vector.shape_cast %4 : vector<1x16xi1> to vector<1x16xi1>
    %83 = vector.broadcast %82 : vector<1x16xi1> to vector<16x16xi1>
    %84 = vector.broadcast %cst_37 : f32 to vector<16x16xf32>
    %85 = arith.select %83, %81, %84 : vector<16x16xi1>, vector<16x16xf32>
    %86 = vector.shape_cast %85 : vector<16x16xf32> to vector<2x8x16xf32>
    %c0_38 = arith.constant 0 : index
    %c0_39 = arith.constant 0 : index
    %c0_40 = arith.constant 0 : index
    %87 = vector.load %arg6[%c0_38, %c0_39, %c0_40] : memref<3x8x8xbf16, #tpu.memory_space<vmem>>, vector<1x8x8xbf16>
    %88 = vector.shape_cast %87 : vector<1x8x8xbf16> to vector<8x8xbf16>
    %89 = vector.shape_cast %88 : vector<8x8xbf16> to vector<1x8x8xbf16>
    %90 = vector.broadcast %89 : vector<1x8x8xbf16> to vector<2x8x8xbf16>
    %91 = arith.truncf %80 : vector<2x8x16xf32> to vector<2x8x16xbf16>
    "tpu.trace_start"() <{level = 10 : i32, message = "boc,bcl->bol"}> : () -> ()
    %cst_41 = arith.constant dense<0.000000e+00> : vector<2x8x16xf32>
    %92 = tpu.matmul %90, %91, %cst_41 {dimension_numbers = #tpu.dot_dimension_numbers<[2], [1], [1], [2], [0, 0, 0, 1, 1, 2], [0], [0]>} : vector<2x8x8xbf16>, vector<2x8x16xbf16>, vector<2x8x16xf32> -> vector<2x8x16xf32>
    "tpu.trace_stop"() : () -> ()
    %c1_42 = arith.constant 1 : index
    %c0_43 = arith.constant 0 : index
    %c0_44 = arith.constant 0 : index
    %93 = vector.load %arg6[%c1_42, %c0_43, %c0_44] : memref<3x8x8xbf16, #tpu.memory_space<vmem>>, vector<1x8x8xbf16>
    %94 = vector.shape_cast %93 : vector<1x8x8xbf16> to vector<8x8xbf16>
    %95 = vector.shape_cast %94 : vector<8x8xbf16> to vector<1x8x8xbf16>
    %96 = vector.broadcast %95 : vector<1x8x8xbf16> to vector<2x8x8xbf16>
    %97 = arith.truncf %73 : vector<2x8x16xf32> to vector<2x8x16xbf16>
    "tpu.trace_start"() <{level = 10 : i32, message = "boc,bcl->bol"}> : () -> ()
    %cst_45 = arith.constant dense<0.000000e+00> : vector<2x8x16xf32>
    %98 = tpu.matmul %96, %97, %cst_45 {dimension_numbers = #tpu.dot_dimension_numbers<[2], [1], [1], [2], [0, 0, 0, 1, 1, 2], [0], [0]>} : vector<2x8x8xbf16>, vector<2x8x16xbf16>, vector<2x8x16xf32> -> vector<2x8x16xf32>
    "tpu.trace_stop"() : () -> ()
    %99 = arith.addf %92, %98 : vector<2x8x16xf32>
    %c2_46 = arith.constant 2 : index
    %c0_47 = arith.constant 0 : index
    %c0_48 = arith.constant 0 : index
    %100 = vector.load %arg6[%c2_46, %c0_47, %c0_48] : memref<3x8x8xbf16, #tpu.memory_space<vmem>>, vector<1x8x8xbf16>
    %101 = vector.shape_cast %100 : vector<1x8x8xbf16> to vector<8x8xbf16>
    %102 = vector.shape_cast %101 : vector<8x8xbf16> to vector<1x8x8xbf16>
    %103 = vector.broadcast %102 : vector<1x8x8xbf16> to vector<2x8x8xbf16>
    %104 = arith.truncf %86 : vector<2x8x16xf32> to vector<2x8x16xbf16>
    "tpu.trace_start"() <{level = 10 : i32, message = "boc,bcl->bol"}> : () -> ()
    %cst_49 = arith.constant dense<0.000000e+00> : vector<2x8x16xf32>
    %105 = tpu.matmul %103, %104, %cst_49 {dimension_numbers = #tpu.dot_dimension_numbers<[2], [1], [1], [2], [0, 0, 0, 1, 1, 2], [0], [0]>} : vector<2x8x8xbf16>, vector<2x8x16xbf16>, vector<2x8x16xf32> -> vector<2x8x16xf32>
    "tpu.trace_stop"() : () -> ()
    %106 = arith.addf %99, %105 : vector<2x8x16xf32>
    %cst_50 = arith.constant dense<0.000000e+00> : vector<2x8xf32>
    %107 = vector.multi_reduction <add>, %106, %cst_50 [2] : vector<2x8x16xf32> to vector<2x8xf32>
    %108 = vector.shape_cast %107 : vector<2x8xf32> to vector<2x8x1xf32>
    %109 = arith.mulf %106, %106 : vector<2x8x16xf32>
    %cst_51 = arith.constant dense<0.000000e+00> : vector<2x8xf32>
    %110 = vector.multi_reduction <add>, %109, %cst_51 [2] : vector<2x8x16xf32> to vector<2x8xf32>
    %111 = vector.shape_cast %110 : vector<2x8xf32> to vector<2x8x1xf32>
    %cst_52 = arith.constant dense<0.000000e+00> : vector<8x1xf32>
    %112 = vector.multi_reduction <add>, %108, %cst_52 [0] : vector<2x8x1xf32> to vector<8x1xf32>
    %113 = vector.shape_cast %112 : vector<8x1xf32> to vector<1x8x1xf32>
    %cst_53 = arith.constant dense<0.000000e+00> : vector<8x1xf32>
    %114 = vector.multi_reduction <add>, %111, %cst_53 [0] : vector<2x8x1xf32> to vector<8x1xf32>
    %115 = vector.shape_cast %114 : vector<8x1xf32> to vector<1x8x1xf32>
    %cst_54 = arith.constant 3.125000e-02 : f32
    %116 = vector.broadcast %cst_54 : f32 to vector<1x8x1xf32>
    %117 = arith.mulf %113, %116 : vector<1x8x1xf32>
    %cst_55 = arith.constant 3.125000e-02 : f32
    %118 = vector.broadcast %cst_55 : f32 to vector<1x8x1xf32>
    %119 = arith.mulf %115, %118 : vector<1x8x1xf32>
    %120 = arith.mulf %117, %117 : vector<1x8x1xf32>
    %121 = arith.subf %119, %120 : vector<1x8x1xf32>
    %cst_56 = arith.constant 9.99999974E-6 : f32
    %122 = vector.broadcast %cst_56 : f32 to vector<1x8x1xf32>
    %123 = arith.addf %121, %122 : vector<1x8x1xf32>
    %124 = math.rsqrt %123 : vector<1x8x1xf32>
    %c0_57 = arith.constant 0 : index
    %c0_58 = arith.constant 0 : index
    %c0_59 = arith.constant 0 : index
    %125 = vector.load %arg7[%c0_57, %c0_58, %c0_59] : memref<1x8x1xf32, #tpu.memory_space<vmem>>, vector<1x8x1xf32>
    %126 = arith.mulf %124, %125 : vector<1x8x1xf32>
    %127 = vector.broadcast %117 : vector<1x8x1xf32> to vector<2x8x16xf32>
    %128 = arith.subf %106, %127 : vector<2x8x16xf32>
    %129 = vector.broadcast %126 : vector<1x8x1xf32> to vector<2x8x16xf32>
    %130 = arith.mulf %128, %129 : vector<2x8x16xf32>
    %c0_60 = arith.constant 0 : index
    %c0_61 = arith.constant 0 : index
    %c0_62 = arith.constant 0 : index
    %131 = vector.load %arg8[%c0_60, %c0_61, %c0_62] : memref<1x8x1xf32, #tpu.memory_space<vmem>>, vector<1x8x1xf32>
    %132 = vector.broadcast %131 : vector<1x8x1xf32> to vector<2x8x16xf32>
    %133 = arith.addf %130, %132 : vector<2x8x16xf32>
    %cst_63 = arith.constant 0.000000e+00 : f32
    %134 = vector.broadcast %cst_63 : f32 to vector<2x8x16xf32>
    %135 = arith.maximumf %133, %134 : vector<2x8x16xf32>
    %c0_64 = arith.constant 0 : index
    %c0_65 = arith.constant 0 : index
    %c0_66 = arith.constant 0 : index
    %136 = vector.load %arg9[%c0_64, %c0_65, %c0_66] : memref<2x8x16xf32, #tpu.memory_space<vmem>>, vector<2x8x16xf32>
    tpu.vector_store %arg9[%c0_64, %c0_65, %c0_66], %135 {strides = array<i32>} : memref<2x8x16xf32, #tpu.memory_space<vmem>>, vector<2x8x16xf32>,
    return
  }
}

</mosaic_0001>

<bundles_post_ra>
// kernel: tpu_custom_call.1
= control target key start
LH: loop header
LB: loop body
LE: loop exit
PB: predicated region body
PF: predicated region fallthrough
CT: control target
= control target key end

     0   :  { %vm45_vm0 = vcmask 1046528   ;;  %v1177_v2 = vmov 0.0   ;;  %vm1178_vm1 = vmmov 0   ;;  %vm41_vm2 = vcmask 56320   ;;  %s1404_s0 = inlined_call_operand.vmem [shape: f32[2,8,7], index: 0, kind: input, shape index: {}]   ;;  %s1405_s1 = inlined_call_operand.vmem [shape: f32[2,8,16], index: 1, kind: input, shape index: {}]   ;;  %s1406_s2 = inlined_call_operand.vmem [shape: f32[7,16], index: 2, kind: input, shape index: {}]   ;;  %s1407_s3 = inlined_call_operand.vmem [shape: bf16[3,8,16], index: 3, kind: input, shape index: {}]   ;;  %s1408_s4 = inlined_call_operand.vmem [shape: f32[1,8,1], index: 4, kind: input, shape index: {}]   ;;  %s1409_s5 = inlined_call_operand.vmem [shape: f32[1,8,1], index: 5, kind: input, shape index: {}]   ;;  %s1410_s6 = inlined_call_operand.vmem [shape: bf16[3,8,8], index: 6, kind: input, shape index: {}]   ;;  %s1411_s7 = inlined_call_operand.vmem [shape: f32[1,8,1], index: 7, kind: input, shape index: {}]   ;;  %s1412_s8 = inlined_call_operand.vmem [shape: f32[1,8,1], index: 8, kind: input, shape index: {}]   ;;  %s1413_s9 = inlined_call_operand.hbm [shape: f32[2,8,16], index: 9, kind: output, shape index: {}]  }
   0x1   :  { %v40_v0 = vld [vmem:[%s1406_s2] sm:$0x7f]  ;;  %998 = vmatprep.subr.mxu0 %v1177_v2  ;;  %1000 = vmatprep.mubr.msk.f32.mxu0 %vm1178_vm1, %v1177_v2 }
   0x2   :  { %v38_v1 = vld [vmem:[%s1404_s0] sm:$0xff] }
   0x3   :  { %14 = vsyncpa [#allocation3], 0  ;;  %999 = vmatpush3.msk.msra.mxu0 %vm45_vm0, %v40_v0  ;;  %1003 = vmatprep.subr.mxu1 %v1177_v2  ;;  %v39_v3 = vld [vmem:[%s1404_s0 + $0x8] sm:$0xff]  ;;  %v192_v4 = vld [vmem:[%s1405_s1] sm:$0xff]  ;;  %s1179_s17 = smov 16   ;;  %vm194_vm3 = vcmask 1047680   ;;  %v34_v47 = vlaneseq }
   0x4   :  { %1001 = vmatmul.mubr.msk.f32.vlgmr.msra.gmra.mxu0 %vm41_vm2, %v38_v1  ;;  %1004 = vmatpush3.msk.msra.mxu1 %vm45_vm0, %v40_v0  ;;  %v193_v6 = vld [vmem:[%s1405_s1 + $0x8] sm:$0xff]  ;;  %v942_v23 = vld [vmem:[%s1407_s3 + $0x4] sm:$0xf]  ;;  %vm266_vm4 = vcmask 130048   ;;  %s1180_s19 = smov 113   ;;  %s1181_s20 = smov 127  }
   0x5   :  { %1005 = vmatprep.mubr.msk.f32.mxu1 %vm1178_vm1, %v1177_v2  ;;  %1008 = vmatprep.subr.bf16.mxu0 %v1177_v2  ;;  %v1290_v48 = vand.u32 127, %v34_v47  ;;  %v259_v60 = vld [vmem:[%s1407_s3] sm:$0xf]  ;;  %vm606_vm9 = vcmask 1043456   ;;  %vm602_vm10 = vcmask 64512  }
   0x6   :  { %1006 = vmatmul.mubr.msk.f32.vlgmr.msra.gmra.mxu1 %vm41_vm2, %v39_v3  ;;  %1014 = vmatprep.subr.bf16.mxu1 %v1177_v2 }
   0x7   :  { %1010 = vmatprep.mubr.msk.bf16.mxu0 %vm1178_vm1, %v1177_v2  ;;  %1016 = vmatprep.mubr.msk.bf16.mxu1 %vm1178_vm1, %v1177_v2  ;;  %vm36_vm5 = vcmp.ne.s32.totalorder %v1290_v48, 0  ;;  %vm37_vm7 = vcmp.ne.s32.totalorder %v1290_v48, 15 }
   0x8   :  { %vm1296_vm6 = vmpackc.low %vm36_vm5, %vm36_vm5 }
   0x9   :  { %vm954_vm8 = vmpackc.low %vm37_vm7, %vm37_vm7 }
  0xc4   :  { %v115_v5 = vpop.f32.mrf.mxu0 }
  0xc5   :  { %v1089_v7 = vpack.i.bf16 %v115_v5, %v192_v4  ;;  %v264_v8 = vpack.c.bf16 %v115_v5, %v192_v4 }
  0xc6   :  { %v1002_v9 = vpop.f32.mrf.mxu0  ;;  %v188_v10 = vpop.f32.mrf.mxu1 }
  0xc7   :  { %1090 = vrot.lane.b32.xlu0 %v1089_v7, %s1179_s17  ;;  %1009 = vmatpush3.bf16.msra.mxu0 %v264_v8  ;;  %v265_v11 = vpack.c.bf16 %v188_v10, %v193_v6  ;;  %v1094_v12 = vpack.i.bf16 %v188_v10, %v193_v6 }
  0xc8   :  { %v1007_v13 = vpop.f32.mrf.mxu1  ;;  %1020 = vmatprep.subr.bf16.mxu0 %v1177_v2 }
  0xc9   :  { %1015 = vmatpush3.bf16.msra.mxu1 %v265_v11 }
  0xca   :  { %1026 = vmatprep.subr.bf16.mxu1 %v1177_v2  ;;  %1011 = vmatmul.mubr.msk.bf16.vlgmr.msra.gmra.mxu0 %vm266_vm4, %v942_v23 }
  0xcb   :  { %1095 = vrot.lane.b32.xlu0 %v1094_v12, %s1179_s17  ;;  %1022 = vmatprep.mubr.msk.bf16.mxu0 %vm1178_vm1, %v1177_v2 }
  0xcc   :  { %1017 = vmatmul.mubr.msk.bf16.vlgmr.msra.gmra.mxu1 %vm266_vm4, %v942_v23 }
  0xcd   :  { %1028 = vmatprep.mubr.msk.bf16.mxu1 %vm1178_vm1, %v1177_v2 }
 0x139   :  { %v1091_v14 = vpop.permute.xlu0 %1090 }
 0x13a   :  { %v1093_v15 = vunpack.i.h.bf16 %v1091_v14  ;;  %v1092_v16 = vunpack.i.l.bf16 %v1091_v14 }
 0x13c   :  { %v197_v17 = vsel %vm194_vm3, %v1092_v16, %v192_v4  ;;  %v200_v18 = vsel %vm194_vm3, %v1093_v15, %v115_v5 }
 0x13d   :  { %v1096_v19 = vpop.permute.xlu0 %1095  ;;  %v1099_v20 = vpack.i.bf16 %v200_v18, %v197_v17 }
 0x13e   :  { %v1098_v21 = vunpack.i.h.bf16 %v1096_v19  ;;  %v1097_v22 = vunpack.i.l.bf16 %v1096_v19 }
 0x13f   :  { %1100 = vrot.lane.b32.xlu1 %v1099_v20, %s1179_s17 }
 0x140   :  { %v203_v24 = vsel %vm194_vm3, %v1097_v22, %v193_v6  ;;  %v206_v25 = vsel %vm194_vm3, %v1098_v21, %v188_v10 }
 0x141   :  { %v1104_v26 = vpack.i.bf16 %v206_v25, %v203_v24 }
 0x143   :  { %1105 = vrot.lane.b32.xlu1 %v1104_v26, %s1179_s17 }
 0x18a   :  { %v304_v39 = vpop.f32.mrf.mxu0 }
 0x18c   :  { %v344_v40 = vpop.f32.mrf.mxu1  ;;  %v1012_v41 = vpop.f32.mrf.mxu0 }
 0x18e   :  { %v1018_v42 = vpop.f32.mrf.mxu1  ;;  %v307_v43 = vpop.f32.mrf.mxu0 }
 0x190   :  { %v347_v44 = vpop.f32.mrf.mxu1  ;;  %v1013_v45 = vpop.f32.mrf.mxu0 }
 0x191   :  { %v544_v44 = vld [vmem:[%s1408_s4] sm:$0xff] }
 0x192   :  { %v1019_v46 = vpop.f32.mrf.mxu1 }
 0x1b1   :  { %v1101_v27 = vpop.permute.xlu1 %1100 }
 0x1b2   :  { %v1103_v28 = vunpack.i.h.bf16 %v1101_v27  ;;  %v1102_v29 = vunpack.i.l.bf16 %v1101_v27 }
 0x1b4   :  { %v215_v30 = vsel %vm194_vm3, %v1102_v29, %v192_v4  ;;  %v216_v31 = vsel %vm194_vm3, %v1103_v28, %v115_v5  ;;  %v953_v4 = vld [vmem:[%s1407_s3 + $0x8] sm:$0xf] }
 0x1b5   :  { %v1106_v32 = vpop.permute.xlu1 %1105  ;;  %v1109_v33 = vpack.i.bf16 %v216_v31, %v215_v30  ;;  %v1182_v31 = vmov 0  }
 0x1b6   :  { %v1108_v34 = vunpack.i.h.bf16 %v1106_v32  ;;  %v1107_v35 = vunpack.i.l.bf16 %v1106_v32  ;;  %1129 = vset.pattern.permute.xlu1 %v1182_v31  ;;  %1130 = vset.pattern.permute.xlu0 %v1182_v31  ;;  %v555_v32 = vld [vmem:[%s1409_s5] sm:$0xff]  ;;  %v967_v31 = vld [vmem:[%s1410_s6 + $0x8] sm:$0xf] }
 0x1b7   :  { %1110 = vrot.lane.b32.xlu0 %v1109_v33, %s1180_s19 }
 0x1b8   :  { %v217_v36 = vsel %vm194_vm3, %v1107_v35, %v193_v6  ;;  %v218_v37 = vsel %vm194_vm3, %v1108_v34, %v188_v10 }
 0x1b9   :  { %v1114_v38 = vpack.i.bf16 %v218_v37, %v217_v36 }
 0x1bb   :  { %1115 = vrot.lane.b32.xlu1 %v1114_v38, %s1180_s19  ;;  %1120 = vrot.lane.b32.xlu0 %v1109_v33, %s1181_s20 }
 0x1bf   :  { %1125 = vrot.lane.b32.xlu1 %v1114_v38, %s1181_s20 }
 0x229   :  { %v1111_v49 = vpop.permute.xlu0 %1110 }
 0x22a   :  { %v1113_v50 = vunpack.i.h.bf16 %v1111_v49  ;;  %v1112_v51 = vunpack.i.l.bf16 %v1111_v49 }
 0x22c   :  { %v946_v53 = vpack.c.bf16 %v1113_v50, %v1112_v51 }
 0x22d   :  { %v1116_v54 = vpop.permute.xlu1 %1115  ;;  %v1121_v55 = vpop.permute.xlu0 %1120 }
 0x22e   :  { %v1118_v56 = vunpack.i.h.bf16 %v1116_v54  ;;  %v1117_v57 = vunpack.i.l.bf16 %v1116_v54  ;;  %v1123_v58 = vunpack.i.h.bf16 %v1121_v55  ;;  %v1122_v59 = vunpack.i.l.bf16 %v1121_v55  ;;  %1021 = vmatpush3.bf16.msk.msra.mxu0 %vm1296_vm6, %v946_v53 }
 0x22f   :  { %1032 = vmatprep.subr.bf16.mxu0 %v1177_v2 }
 0x230   :  { %v950_v61 = vpack.c.bf16 %v1118_v56, %v1117_v57  ;;  %v955_v62 = vpack.c.bf16 %v1123_v58, %v1122_v59 }
 0x231   :  { %v1126_v63 = vpop.permute.xlu1 %1125  ;;  %1023 = vmatmul.mubr.msk.bf16.vlgmr.msra.gmra.mxu0 %vm266_vm4, %v259_v60 }
 0x232   :  { %v1128_v0 = vunpack.i.h.bf16 %v1126_v63  ;;  %v1127_v1 = vunpack.i.l.bf16 %v1126_v63  ;;  %1027 = vmatpush3.bf16.msk.msra.mxu1 %vm1296_vm6, %v950_v61  ;;  %1033 = vmatpush3.bf16.msk.msra.mxu0 %vm954_vm8, %v955_v62 }
 0x233   :  { %1038 = vmatprep.subr.bf16.mxu1 %v1177_v2  ;;  %1034 = vmatprep.mubr.msk.bf16.mxu0 %vm1178_vm1, %v1177_v2 }
 0x234   :  { %v959_v3 = vpack.c.bf16 %v1128_v0, %v1127_v1  ;;  %1044 = vmatprep.subr.bf16.mxu0 %v1177_v2 }
 0x235   :  { %1029 = vmatmul.mubr.msk.bf16.vlgmr.msra.gmra.mxu1 %vm266_vm4, %v259_v60 }
 0x236   :  { %1039 = vmatpush3.bf16.msk.msra.mxu1 %vm954_vm8, %v959_v3  ;;  %1040 = vmatprep.mubr.msk.bf16.mxu1 %vm1178_vm1, %v1177_v2 }
 0x237   :  { %1050 = vmatprep.subr.bf16.mxu1 %v1177_v2 }
 0x239   :  { %1035 = vmatmul.mubr.msk.bf16.vlgmr.msra.gmra.mxu0 %vm266_vm4, %v953_v4 }
 0x23a   :  { %1046 = vmatprep.mubr.msk.bf16.mxu0 %vm1178_vm1, %v1177_v2 }
 0x23d   :  { %1041 = vmatmul.mubr.msk.bf16.vlgmr.msra.gmra.mxu1 %vm266_vm4, %v953_v4 }
 0x23e   :  { %1052 = vmatprep.mubr.msk.bf16.mxu1 %vm1178_vm1, %v1177_v2 }
 0x2f1   :  { %v387_v5 = vpop.f32.mrf.mxu0 }
 0x2f2   :  { %v388_v11 = vadd.f32 %v387_v5, %v304_v39 }
 0x2f3   :  { %v1024_v6 = vpop.f32.mrf.mxu0 }
 0x2f4   :  { %v962_v6 = vld [vmem:[%s1410_s6 + $0x4] sm:$0xf] }
 0x2f5   :  { %v390_v7 = vpop.f32.mrf.mxu0  ;;  %v427_v8 = vpop.f32.mrf.mxu1 }
 0x2f6   :  { %v428_v17 = vadd.f32 %v427_v8, %v344_v40 }
 0x2f7   :  { %v1025_v9 = vpop.f32.mrf.mxu0  ;;  %v1030_v10 = vpop.f32.mrf.mxu1 }
 0x2f9   :  { %v430_v12 = vpop.f32.mrf.mxu1  ;;  %v474_v13 = vpop.f32.mrf.mxu0 }
 0x2fa   :  { %v520_v14 = vadd.f32 %v474_v13, %v388_v11 }
 0x2fb   :  { %v1031_v15 = vpop.f32.mrf.mxu1  ;;  %v1036_v16 = vpop.f32.mrf.mxu0 }
 0x2fc   :  { %v522_v18 = vsel %vm266_vm4, %v520_v14, 0.0  ;;  %v528_v19 = vmul.f32 %v520_v14, %v520_v14 }
 0x2fd   :  { %v514_v20 = vpop.f32.mrf.mxu1  ;;  %523 = vadd.xlane.f32.xlu0 %v522_v18  ;;  %v477_v21 = vpop.f32.mrf.mxu0 }
 0x2fe   :  { %v521_v22 = vadd.f32 %v514_v20, %v428_v17  ;;  %v530_v26 = vsel %vm266_vm4, %v528_v19, 0.0 }
 0x2ff   :  { %v1037_v23 = vpop.f32.mrf.mxu0  ;;  %v1042_v24 = vpop.f32.mrf.mxu1 }
 0x300   :  { %v525_v25 = vsel %vm266_vm4, %v521_v22, 0.0  ;;  %v529_v27 = vmul.f32 %v521_v22, %v521_v22 }
 0x301   :  { %526 = vadd.xlane.f32.xlu1 %v525_v25  ;;  %v517_v28 = vpop.f32.mrf.mxu1  ;;  %531 = vadd.xlane.f32.xlu0 %v530_v26 }
 0x302   :  { %v533_v30 = vsel %vm266_vm4, %v529_v27, 0.0  ;;  %v595_v27 = vld [vmem:[%s1410_s6] sm:$0xf] }
 0x303   :  { %v1043_v29 = vpop.f32.mrf.mxu1 }
 0x305   :  { %534 = vadd.xlane.f32.xlu0 %v533_v30 }
 0x31b   :  { %558 = vperm.xlu0 %1130, %v555_v32  }
 0x386   :  { %v524_v33 = vpop.xlane.xlu0 %523 }
 0x38a   :  { %v527_v34 = vpop.xlane.xlu1 %526  ;;  %v532_v35 = vpop.xlane.xlu0 %531 }
 0x38b   :  { %v536_v36 = vadd.f32 %v527_v34, %v524_v33 }
 0x38d   :  { %v538_v37 = vmul.f32 0.03125, %v536_v36 }
 0x38e   :  { %v535_v38 = vpop.xlane.xlu0 %534 }
 0x38f   :  { %v537_v39 = vadd.f32 %v535_v38, %v532_v35  ;;  %v540_v40 = vmul.f32 %v538_v37, %v538_v37  ;;  %v546_v47 = vsub.f32 %v520_v14, %v538_v37  ;;  %v547_v49 = vsub.f32 %v521_v22, %v538_v37 }
 0x391   :  { %v539_v41 = vmul.f32 0.03125, %v537_v39 }
 0x393   :  { %v541_v42 = vsub.f32 %v539_v41, %v540_v40 }
 0x395   :  { %v542_v43 = vadd.f32 1e-05, %v541_v42 }
 0x396   :  { %v559_v51 = vpop.permute.xlu0 %558 }
 0x397   :  { %1151 = vrsqrt.f32 %v542_v43 }
 0x3a4   :  { %v1152_v45 = vpop.eup %1151 }
 0x3a5   :  { %v545_v46 = vmul.f32 %v1152_v45, %v544_v44 }
 0x3a7   :  { %550 = vperm.xlu1 %1129, %v545_v46  }
 0x422   :  { %v551_v50 = vpop.permute.xlu1 %550 }
 0x423   :  { %v553_v52 = vmul.f32 %v551_v50, %v546_v47  ;;  %v554_v53 = vmul.f32 %v551_v50, %v547_v49 }
 0x425   :  { %v561_v54 = vadd.f32 %v559_v51, %v553_v52  ;;  %v562_v55 = vadd.f32 %v559_v51, %v554_v53 }
 0x427   :  { %v563_v56 = vmax.f32 %v561_v54, 0.0  ;;  %v564_v57 = vmax.f32 %v562_v55, 0.0 }
 0x429   :  { %v1131_v58 = vpack.i.bf16 %v564_v57, %v563_v56  ;;  %v600_v59 = vpack.c.bf16 %v563_v56, %v563_v56  ;;  %v601_v60 = vpack.c.bf16 %v564_v57, %v564_v57 }
 0x42b   :  { %1132 = vrot.lane.b32.xlu1 %v1131_v58, %s1179_s17  ;;  %v608_v61 = vsel %vm606_vm9, %v600_v59, 0  ;;  %v651_v62 = vsel %vm606_vm9, %v601_v60, 0 }
 0x42c   :  { %1045 = vmatpush3.bf16.msra.mxu0 %v608_v61  ;;  %1051 = vmatpush3.bf16.msra.mxu1 %v651_v62 }
 0x42d   :  { %1056 = vmatprep.subr.bf16.mxu0 %v1177_v2  ;;  %1062 = vmatprep.subr.bf16.mxu1 %v1177_v2 }
 0x42f   :  { %1047 = vmatmul.mubr.msk.bf16.vlgmr.msra.gmra.mxu0 %vm602_vm10, %v962_v6  ;;  %1053 = vmatmul.mubr.msk.bf16.vlgmr.msra.gmra.mxu1 %vm602_vm10, %v962_v6 }
 0x430   :  { %1058 = vmatprep.mubr.msk.bf16.mxu0 %vm1178_vm1, %v1177_v2  ;;  %1064 = vmatprep.mubr.msk.bf16.mxu1 %vm1178_vm1, %v1177_v2 }
 0x49d   :  { %v1133_v63 = vpop.permute.xlu1 %1132 }
 0x49e   :  { %v1135_v0 = vunpack.i.h.bf16 %v1133_v63  ;;  %v1134_v1 = vunpack.i.l.bf16 %v1133_v63 }
 0x4a0   :  { %v567_v3 = vsel %vm194_vm3, %v1134_v1, %v563_v56  ;;  %v570_v4 = vsel %vm194_vm3, %v1135_v0, %v564_v57 }
 0x4a1   :  { %v1136_v5 = vpack.i.bf16 %v570_v4, %v567_v3  ;;  %v910_v3 = vld [vmem:[%s1412_s8] sm:$0xff]  ;;  %s1183_s8 = smov [#allocation2]  }
 0x4a2   :  { %s927_s14 = sshll.u32 %s1183_s8, 4  ;;  %s928_s14 = int_to_ptr.vmem [resolvable:$true] %s927_s14 }
 0x4a3   :  { %1137 = vrot.lane.b32.xlu1 %v1136_v5, %s1179_s17  ;;  %p1160_p1 = scmp.lt.s32.totalorder %s928_s14, %s928_s14 }
 0x4ef   :  { %v644_v32 = vpop.f32.mrf.mxu0  ;;  %v687_v33 = vpop.f32.mrf.mxu1 }
 0x4f1   :  { %v1048_v34 = vpop.f32.mrf.mxu0  ;;  %v1054_v35 = vpop.f32.mrf.mxu1 }
 0x4f3   :  { %v647_v36 = vpop.f32.mrf.mxu0  ;;  %v690_v37 = vpop.f32.mrf.mxu1 }
 0x4f5   :  { %v1049_v38 = vpop.f32.mrf.mxu0  ;;  %v1055_v39 = vpop.f32.mrf.mxu1 }
 0x515   :  { %v1138_v7 = vpop.permute.xlu1 %1137 }
 0x516   :  { %v1140_v8 = vunpack.i.h.bf16 %v1138_v7  ;;  %v1139_v9 = vunpack.i.l.bf16 %v1138_v7 }
 0x518   :  { %v575_v10 = vsel %vm194_vm3, %v1139_v9, %v563_v56  ;;  %v576_v11 = vsel %vm194_vm3, %v1140_v8, %v564_v57 }
 0x519   :  { %v1141_v12 = vpack.i.bf16 %v576_v11, %v575_v10 }
 0x51b   :  { %1142 = vrot.lane.b32.xlu1 %v1141_v12, %s1180_s19 }
 0x51f   :  { %1147 = vrot.lane.b32.xlu1 %v1141_v12, %s1181_s20 }
 0x58d   :  { %v1143_v13 = vpop.permute.xlu1 %1142 }
 0x58e   :  { %v1145_v14 = vunpack.i.h.bf16 %v1143_v13  ;;  %v1144_v15 = vunpack.i.l.bf16 %v1143_v13 }
 0x590   :  { %v586_v16 = vsel %vm36_vm5, %v1145_v14, 0.0  ;;  %v585_v17 = vsel %vm36_vm5, %v1144_v15, 0.0  ;;  %v899_v15 = vld [vmem:[%s1411_s7] sm:$0xff]  ;;  %s1155_s7 = scalar_lea.vmem %s928_s14, 256 }
 0x591   :  { %v597_v18 = vpack.c.bf16 %v586_v16, %v586_v16  ;;  %v596_v19 = vpack.c.bf16 %v585_v17, %v585_v17  ;;  %v1148_v20 = vpop.permute.xlu1 %1147  ;;  %p1156_p0 = scmp.ne.s32.totalorder %s928_s14, %s1155_s7  ;;  %p1161_p2 = scmp.lt.s32.totalorder %s1155_s7, %s1155_s7 }
 0x592   :  { %v1150_v21 = vunpack.i.h.bf16 %v1148_v20  ;;  %v1149_v22 = vunpack.i.l.bf16 %v1148_v20 }
 0x593   :  { %v697_v23 = vsel %vm606_vm9, %v596_v19, 0  ;;  %v740_v24 = vsel %vm606_vm9, %v597_v18, 0  ;;  %p1162_p3 = por %p1161_p2, %p1160_p1 }
 0x594   :  { %v594_v25 = vsel %vm37_vm7, %v1150_v21, 0.0  ;;  %v593_v26 = vsel %vm37_vm7, %v1149_v22, 0.0  ;;  %1057 = vmatpush3.bf16.msra.mxu0 %v697_v23  ;;  %1063 = vmatpush3.bf16.msra.mxu1 %v740_v24 }
 0x595   :  { %v785_v28 = vpack.c.bf16 %v594_v25, %v594_v25  ;;  %v784_v29 = vpack.c.bf16 %v593_v26, %v593_v26  ;;  %1068 = vmatprep.subr.bf16.mxu0 %v1177_v2  ;;  %1074 = vmatprep.subr.bf16.mxu1 %v1177_v2  ;;  %p1163_p4 = pnand %p1162_p3, %p1156_p0 }
 0x597   :  { %1059 = vmatmul.mubr.msk.bf16.vlgmr.msra.gmra.mxu0 %vm602_vm10, %v595_v27  ;;  %1065 = vmatmul.mubr.msk.bf16.vlgmr.msra.gmra.mxu1 %vm602_vm10, %v595_v27  ;;  %v790_v30 = vsel %vm606_vm9, %v784_v29, 0  ;;  %v833_v48 = vsel %vm606_vm9, %v785_v28, 0 }
 0x598   :  { %1069 = vmatpush3.bf16.msra.mxu0 %v790_v30  ;;  %1075 = vmatpush3.bf16.msra.mxu1 %v833_v48 }
 0x599   :  { %1070 = vmatprep.mubr.msk.bf16.mxu0 %vm1178_vm1, %v1177_v2  ;;  %1076 = vmatprep.mubr.msk.bf16.mxu1 %vm1178_vm1, %v1177_v2 }
 0x59f   :  { %1071 = vmatmul.mubr.msk.bf16.vlgmr.msra.gmra.mxu0 %vm602_vm10, %v967_v31  ;;  %1077 = vmatmul.mubr.msk.bf16.vlgmr.msra.gmra.mxu1 %vm602_vm10, %v967_v31 }
 0x657   :  { %v733_v40 = vpop.f32.mrf.mxu0  ;;  %v776_v41 = vpop.f32.mrf.mxu1 }
 0x658   :  { %v734_v47 = vadd.f32 %v733_v40, %v644_v32  ;;  %v777_v49 = vadd.f32 %v776_v41, %v687_v33 }
 0x659   :  { %v1060_v42 = vpop.f32.mrf.mxu0  ;;  %v1066_v2 = vpop.f32.mrf.mxu1 }
 0x65b   :  { %v736_v43 = vpop.f32.mrf.mxu0  ;;  %v779_v44 = vpop.f32.mrf.mxu1 }
 0x65d   :  { %v1061_v45 = vpop.f32.mrf.mxu0  ;;  %v1067_v46 = vpop.f32.mrf.mxu1 }
 0x65f   :  { %v826_v50 = vpop.f32.mrf.mxu0  ;;  %v869_v51 = vpop.f32.mrf.mxu1 }
 0x660   :  { %v875_v52 = vadd.f32 %v826_v50, %v734_v47  ;;  %v876_v53 = vadd.f32 %v869_v51, %v777_v49 }
 0x661   :  { %v1072_v54 = vpop.f32.mrf.mxu0  ;;  %v1078_v55 = vpop.f32.mrf.mxu1 }
 0x662   :  { %v880_v56 = vsel %vm266_vm4, %v876_v53, 0.0  ;;  %v877_v57 = vsel %vm266_vm4, %v875_v52, 0.0  ;;  %v883_v58 = vmul.f32 %v875_v52, %v875_v52  ;;  %v884_v0 = vmul.f32 %v876_v53, %v876_v53 }
 0x663   :  { %881 = vadd.xlane.f32.xlu0 %v880_v56  ;;  %878 = vadd.xlane.f32.xlu1 %v877_v57  ;;  %v829_v59 = vpop.f32.mrf.mxu0  ;;  %v872_v60 = vpop.f32.mrf.mxu1 }
 0x664   :  { %v885_v63 = vsel %vm266_vm4, %v883_v58, 0.0  ;;  %v888_v1 = vsel %vm266_vm4, %v884_v0, 0.0 }
 0x665   :  { %v1073_v61 = vpop.f32.mrf.mxu0  ;;  %v1079_v62 = vpop.f32.mrf.mxu1 }
 0x667   :  { %886 = vadd.xlane.f32.xlu1 %v885_v63 }
 0x66b   :  { %889 = vadd.xlane.f32.xlu1 %v888_v1 }
 0x679   :  { %913 = vperm.xlu0 %1130, %v910_v3  }
 0x6ec   :  { %v882_v4 = vpop.xlane.xlu0 %881  ;;  %v879_v5 = vpop.xlane.xlu1 %878 }
 0x6ed   :  { %v891_v6 = vadd.f32 %v882_v4, %v879_v5 }
 0x6ef   :  { %v893_v8 = vmul.f32 0.03125, %v891_v6 }
 0x6f0   :  { %v887_v7 = vpop.xlane.xlu1 %886 }
 0x6f1   :  { %v895_v11 = vmul.f32 %v893_v8, %v893_v8  ;;  %v901_v18 = vsub.f32 %v875_v52, %v893_v8  ;;  %v902_v19 = vsub.f32 %v876_v53, %v893_v8 }
 0x6f4   :  { %v890_v9 = vpop.xlane.xlu1 %889  ;;  %v914_v23 = vpop.permute.xlu0 %913 }
 0x6f5   :  { %v892_v10 = vadd.f32 %v890_v9, %v887_v7 }
 0x6f7   :  { %v894_v12 = vmul.f32 0.03125, %v892_v10 }
 0x6f9   :  { %v896_v13 = vsub.f32 %v894_v12, %v895_v11 }
 0x6fb   :  { %v897_v14 = vadd.f32 1e-05, %v896_v13 }
 0x6fd   :  { %1153 = vrsqrt.f32 %v897_v14 }
 0x70a   :  { %v1154_v16 = vpop.eup %1153 }
 0x70b   :  { %v900_v17 = vmul.f32 %v1154_v16, %v899_v15 }
 0x70d   :  { %905 = vperm.xlu1 %1129, %v900_v17  }
 0x788   :  { %v906_v20 = vpop.permute.xlu1 %905 }
 0x789   :  { %v908_v21 = vmul.f32 %v906_v20, %v901_v18  ;;  %v909_v22 = vmul.f32 %v906_v20, %v902_v19 }
 0x78b   :  { %v916_v24 = vadd.f32 %v914_v23, %v908_v21  ;;  %v917_v25 = vadd.f32 %v914_v23, %v909_v22 }
 0x78d   :  { %v918_v26 = vmax.f32 %v916_v24, 0.0  ;;  %v919_v27 = vmax.f32 %v917_v25, 0.0 }
 0x78f   :  { %920 = vst.msk [vmem:[#allocation2] sm:$0xff] %vm266_vm4, %v918_v26  ;;  %921 = vst.msk [vmem:[#allocation2 + $0x8] sm:$0xff] %vm266_vm4, %v919_v27 }
 0x790   :  { %1166 = shalt.err (!%p1163_p4)
}
 0x791   :  { %s1184_s2 = smov 128   ;;  %s1185_s15 = smov 8  }
 0x792   :  { %933 = dma.vmem_to_hbm [thread:$0]  %s928_s14, 256, %s1413_s9, [#allocation3], %s1184_s2, %s1184_s2, %s1185_s15  }
 0x793   :  { %1175 = dma.done.wait [#allocation3], 256  }
 0x794   :  { %1176 = vsyncadd [#allocation3], 4294967040 }
 0x795   :  { %937 = vsyncpa [#allocation3], 1 }

</bundles_post_ra>
